<compile_context>
chip_gen: v6e
topology: v6e:2x2x1
jax: 0.10.0
libtpu: 0.0.40
codegen_flags: <defaults>
</compile_context>

<pallas_src>
import functools

import jax
import jax.numpy as jnp
from jax import lax
from jax.experimental import pallas as pl
from jax.experimental.pallas import tpu as pltpu

LOG_SIG_MAX = 2.0
LOG_SIG_MIN = -20.0

_LANE = 128
_SUBLANE = 8
_MAX_TILE_ROWS = 1024
_VMEM_BUDGET = 40 * 1024 * 1024      # conservative target across v5e/v6e/v7x
_VMEM_CEILING = 64 * 1024 * 1024     # never request more than v7x physical VMEM


def _round_up(n, m):
    return ((n + m - 1) // m) * m


def _cdiv(a, b):
    return -(-a // b)


def _pad2d(a, rows, cols):
    r, c = a.shape
    if r == rows and c == cols:
        return a
    return jnp.pad(a, ((0, rows - r), (0, cols - c)))


def _actor_kernel(x_ref, xmean_ref, inv_xstd_ref,
                  w1_ref, b1_ref, w2_ref, b2_ref,
                  wh_ref, bh_ref,
                  out_ref, *, action_dim, use_bf16):
    # normalize input (multiply by precomputed reciprocal of xstd)
    xn = (x_ref[...] - xmean_ref[...]) * inv_xstd_ref[...]

    def mm(a, w_ref):
        # Weights are already bf16 (wrapper-side cast) on the bf16 path; only
        # the activation needs a cast here.  Accumulate in f32 either way.
        if use_bf16:
            a = a.astype(jnp.bfloat16)
        return jnp.dot(a, w_ref[...], preferred_element_type=jnp.float32)

    # fc1 + relu, fc2 + relu (elementwise stays f32)
    h1 = jnp.maximum(mm(xn, w1_ref) + b1_ref[...], 0.0)
    h2 = jnp.maximum(mm(h1, w2_ref) + b2_ref[...], 0.0)

    # fused heads: [mu | log_std | pad] in one matmul, one lane-dense store.
    heads = mm(h2, wh_ref) + bh_ref[...]

    # clamp only the log_std (and padding, harmless) columns.
    col = lax.broadcasted_iota(jnp.int32, heads.shape, 1)
    clipped = jnp.clip(heads, LOG_SIG_MIN, LOG_SIG_MAX)
    out_ref[...] = jnp.where(col >= action_dim, clipped, heads)


@functools.partial(jax.jit, static_argnames=("use_bf16",))
def actor_forward(x, xmean, xstd, params, use_bf16=False):
    """Runs the Actor forward pass in one Pallas call.

    x:      (B, state_dim) float32
    xmean:  (1, state_dim) float32
    xstd:   (1, state_dim) float32
    params: dict of weights (in, out) and biases (1, out)
    Returns (mu, log_std), each (B, action_dim) float32.
    """
    B, state_dim = x.shape
    hidden_dim = params["w1"].shape[1]
    action_dim = params["w_mu"].shape[1]
    head_dim = 2 * action_dim

    # --- lane-dense padded dims ------------------------------------------------
    state_pad = _round_up(state_dim, _LANE)
    hidden_pad = _round_up(hidden_dim, _LANE)
    head_pad = _round_up(head_dim, _LANE)

    w_dtype = jnp.bfloat16 if use_bf16 else jnp.float32
    # TODO(synk): optional fp8 weight path for v7x (f32 accumulate) behind a flag.

    w1 = _pad2d(params["w1"], state_pad, hidden_pad).astype(w_dtype)
    w2 = _pad2d(params["w2"], hidden_pad, hidden_pad).astype(w_dtype)
    w_head = _pad2d(
        jnp.concatenate([params["w_mu"], params["w_ls"]], axis=1),
        hidden_pad, head_pad).astype(w_dtype)
    # Biases stay f32 (tiny, added after the f32 accumulate).
    b1 = _pad2d(params["b1"], 1, hidden_pad)
    b2 = _pad2d(params["b2"], 1, hidden_pad)
    b_head = _pad2d(
        jnp.concatenate([params["b_mu"], params["b_ls"]], axis=1), 1, head_pad)

    xmean_p = _pad2d(xmean, 1, state_pad)
    # Pad the reciprocal with zeros so padded input columns stay exactly zero.
    inv_xstd = _pad2d(jnp.reciprocal(xstd), 1, state_pad)

    # --- batch tiling: even split, >=2 tiles when possible, VMEM-budgeted ------
    wbytes = 2 if use_bf16 else 4
    resident_bytes = (
        (state_pad * hidden_pad + hidden_pad * hidden_pad + hidden_pad * head_pad) * wbytes
        + (2 * hidden_pad + head_pad + 2 * state_pad) * 4)   # biases, xmean, inv_xstd

    def footprint(tb):
        io = 2 * tb * (state_pad + head_pad) * 4              # double-buffered x / out tiles
        tmp = tb * (state_pad + 2 * hidden_pad + head_pad) * 4  # xn, h1, h2, heads
        return resident_bytes + io + tmp

    B8 = _round_up(B, _SUBLANE)
    n_tiles = max(_cdiv(B8, _MAX_TILE_ROWS),      # cap rows per tile
                  min(2, B8 // _SUBLANE),         # >=2 tiles for v7x megacore when B >= 16
                  1)
    TB = _round_up(_cdiv(B8, n_tiles), _SUBLANE)
    while footprint(TB) > _VMEM_BUDGET and TB > _SUBLANE:
        n_tiles += 1
        TB = _round_up(_cdiv(B8, n_tiles), _SUBLANE)

    grid_n = _cdiv(B, TB)
    B_pad = grid_n * TB
    x_p = _pad2d(x, B_pad, state_pad)

    vmem_limit = int(min(max(footprint(TB) * 1.25 + (2 << 20), 16 << 20), _VMEM_CEILING))

    def resident(arr):
        # Whole array, same block every grid step; single-buffered so large
        # weights don't pay a duplicate VMEM copy.
        return pl.BlockSpec(arr.shape, lambda i: (0, 0),
                            pipeline_mode=pl.Buffered(1))

    in_specs = [
        pl.BlockSpec((TB, state_pad), lambda i: (i, 0)),   # x: batch-tiled
        resident(xmean_p), resident(inv_xstd),
        resident(w1), resident(b1),
        resident(w2), resident(b2),
        resident(w_head), resident(b_head),
    ]
    out_spec = pl.BlockSpec((TB, head_pad), lambda i: (i, 0))
    # TODO(synk): fuse the downstream tanh-squash / sampling (or pack several
    # batch rows per 128-lane output row) so the padded head slab never
    # round-trips HBM at large B.

    flops = 2 * B_pad * (state_pad * hidden_pad
                         + hidden_pad * hidden_pad
                         + hidden_pad * head_pad)
    bytes_accessed = (4 * B_pad * (state_pad + head_pad)
                      + wbytes * (state_pad * hidden_pad
                                  + hidden_pad * hidden_pad
                                  + hidden_pad * head_pad)
                      + 4 * (2 * hidden_pad + head_pad + 2 * state_pad))

    kernel = functools.partial(_actor_kernel,
                               action_dim=action_dim,
                               use_bf16=use_bf16)

    out = pl.pallas_call(
        kernel,
        out_shape=jax.ShapeDtypeStruct((B_pad, head_pad), jnp.float32),
        grid=(grid_n,),
        in_specs=in_specs,
        out_specs=out_spec,
        compiler_params=pltpu.CompilerParams(
            dimension_semantics=("parallel",),
            vmem_limit_bytes=vmem_limit),
        cost_estimate=pl.CostEstimate(flops=flops,
                                      transcendentals=0,
                                      bytes_accessed=bytes_accessed),
    )(x_p, xmean_p, inv_xstd, w1, b1, w2, b2, w_head, b_head)

    mu = out[:B, :action_dim]
    log_std = out[:B, action_dim:head_dim]
    return mu, log_std


def _xavier_uniform(key, fan_in, fan_out, gain=1.0):
    # matches torch.nn.init.xavier_uniform_ semantics; stored as (in, out)
    limit = gain * jnp.sqrt(6.0 / (fan_in + fan_out))
    return jax.random.uniform(key, (fan_in, fan_out), jnp.float32, -limit, limit)


def init_actor_params(key, state_dim, action_dim, hidden_dim):
    k1, k2, k3, k4 = jax.random.split(key, 4)
    return {
        "w1": _xavier_uniform(k1, state_dim, hidden_dim),
        "b1": jnp.zeros((1, hidden_dim), jnp.float32),
        "w2": _xavier_uniform(k2, hidden_dim, hidden_dim),
        "b2": jnp.zeros((1, hidden_dim), jnp.float32),
        "w_mu": _xavier_uniform(k3, hidden_dim, action_dim),
        "b_mu": jnp.zeros((1, action_dim), jnp.float32),
        "w_ls": _xavier_uniform(k4, hidden_dim, action_dim),
        "b_ls": jnp.zeros((1, action_dim), jnp.float32),
    }


def actor_forward_ref(x, xmean, xstd, params):
    """Pure-JAX reference mirroring the PyTorch forward."""
    xn = (x - xmean) / xstd
    h1 = jnp.maximum(xn @ params["w1"] + params["b1"], 0.0)
    h2 = jnp.maximum(h1 @ params["w2"] + params["b2"], 0.0)
    mu = h2 @ params["w_mu"] + params["b_mu"]
    ls = jnp.clip(h2 @ params["w_ls"] + params["b_ls"], LOG_SIG_MIN, LOG_SIG_MAX)
    return mu, ls


if __name__ == "__main__":
    key = jax.random.PRNGKey(0)
    k_par, k_x, k_mean, k_std = jax.random.split(key, 4)

    batch = 8
    state_dim = 16
    action_dim = 8
    hidden_dim = 32

    params = init_actor_params(k_par, state_dim, action_dim, hidden_dim)
    x = jax.random.normal(k_x, (batch, state_dim), jnp.float32)
    xmean = jax.random.normal(k_mean, (1, state_dim), jnp.float32) * 0.1
    xstd = jax.random.uniform(k_std, (1, state_dim), jnp.float32, 0.5, 1.5)

    mu_ref, log_std_ref = actor_forward_ref(x, xmean, xstd, params)

    # --- f32 path: must match the reference to 1e-5 -------------------------
    mu, log_std = actor_forward(x, xmean, xstd, params)
    jax.block_until_ready((mu, log_std))
    assert mu.shape == (batch, action_dim)
    assert log_std.shape == (batch, action_dim)
    assert jnp.allclose(mu, mu_ref, atol=1e-5, rtol=1e-5)
    assert jnp.allclose(log_std, log_std_ref, atol=1e-5, rtol=1e-5)
    assert bool(jnp.all(log_std <= LOG_SIG_MAX)) and bool(jnp.all(log_std >= LOG_SIG_MIN))

    # --- bf16 weight path: loose tolerance only (not bit-accurate) ----------
    mu_b, log_std_b = actor_forward(x, xmean, xstd, params, use_bf16=True)
    jax.block_until_ready((mu_b, log_std_b))
    assert jnp.allclose(mu_b, mu_ref, atol=5e-2, rtol=5e-2)
    assert jnp.allclose(log_std_b, log_std_ref, atol=5e-2, rtol=5e-2)

    print("KERNEL_OK")
</pallas_src>

<mosaic_0001>
module attributes {stable_mosaic.version = 11 : i64} {
  func.func @_actor_kernel(%arg0: i32, %arg1: memref<8x128xf32, #tpu.memory_space<vmem>>, %arg2: memref<1x128xf32, #tpu.memory_space<vmem>>, %arg3: memref<1x128xf32, #tpu.memory_space<vmem>>, %arg4: memref<128x128xf32, #tpu.memory_space<vmem>>, %arg5: memref<1x128xf32, #tpu.memory_space<vmem>>, %arg6: memref<128x128xf32, #tpu.memory_space<vmem>>, %arg7: memref<1x128xf32, #tpu.memory_space<vmem>>, %arg8: memref<128x128xf32, #tpu.memory_space<vmem>>, %arg9: memref<1x128xf32, #tpu.memory_space<vmem>>, %arg10: memref<8x128xf32, #tpu.memory_space<vmem>>) attributes {dimension_semantics = [#tpu.dimension_semantics<parallel>], iteration_bounds = array<i64: 1>, scalar_prefetch = 0 : i64, scratch_operands = 0 : i64, tpu.core_type = #tpu.core_type<tc>, window_params = [{transform_indices = @transform_0, window_bounds = array<i64: 8, 128>}, {pipeline_mode = #tpu.pipeline_mode<synchronous>, transform_indices = @transform_1, window_bounds = array<i64: 1, 128>}, {pipeline_mode = #tpu.pipeline_mode<synchronous>, transform_indices = @transform_2, window_bounds = array<i64: 1, 128>}, {pipeline_mode = #tpu.pipeline_mode<synchronous>, transform_indices = @transform_3, window_bounds = array<i64: 128, 128>}, {pipeline_mode = #tpu.pipeline_mode<synchronous>, transform_indices = @transform_4, window_bounds = array<i64: 1, 128>}, {pipeline_mode = #tpu.pipeline_mode<synchronous>, transform_indices = @transform_5, window_bounds = array<i64: 128, 128>}, {pipeline_mode = #tpu.pipeline_mode<synchronous>, transform_indices = @transform_6, window_bounds = array<i64: 1, 128>}, {pipeline_mode = #tpu.pipeline_mode<synchronous>, transform_indices = @transform_7, window_bounds = array<i64: 128, 128>}, {pipeline_mode = #tpu.pipeline_mode<synchronous>, transform_indices = @transform_8, window_bounds = array<i64: 1, 128>}, {transform_indices = @transform_9, window_bounds = array<i64: 8, 128>}]} {
    %c0 = arith.constant 0 : index
    %c0_0 = arith.constant 0 : index
    %0 = vector.load %arg1[%c0, %c0_0] : memref<8x128xf32, #tpu.memory_space<vmem>>, vector<8x128xf32>
    %c0_1 = arith.constant 0 : index
    %c0_2 = arith.constant 0 : index
    %1 = vector.load %arg2[%c0_1, %c0_2] : memref<1x128xf32, #tpu.memory_space<vmem>>, vector<1x128xf32>
    %2 = vector.broadcast %1 : vector<1x128xf32> to vector<8x128xf32>
    %3 = arith.subf %0, %2 : vector<8x128xf32>
    %c0_3 = arith.constant 0 : index
    %c0_4 = arith.constant 0 : index
    %4 = vector.load %arg3[%c0_3, %c0_4] : memref<1x128xf32, #tpu.memory_space<vmem>>, vector<1x128xf32>
    %5 = vector.broadcast %4 : vector<1x128xf32> to vector<8x128xf32>
    %6 = arith.mulf %3, %5 : vector<8x128xf32>
    %c0_5 = arith.constant 0 : index
    %c0_6 = arith.constant 0 : index
    %7 = vector.load %arg4[%c0_5, %c0_6] : memref<128x128xf32, #tpu.memory_space<vmem>>, vector<128x128xf32>
    %cst = arith.constant dense<0.000000e+00> : vector<8x128xf32>
    %8 = tpu.matmul %6, %7, %cst {dimension_numbers = #tpu.dot_dimension_numbers<[1], [0], [0], [1], [0, 0, 1, 1], [], []>} : vector<8x128xf32>, vector<128x128xf32>, vector<8x128xf32> -> vector<8x128xf32>
    %c0_7 = arith.constant 0 : index
    %c0_8 = arith.constant 0 : index
    %9 = vector.load %arg5[%c0_7, %c0_8] : memref<1x128xf32, #tpu.memory_space<vmem>>, vector<1x128xf32>
    %10 = vector.broadcast %9 : vector<1x128xf32> to vector<8x128xf32>
    %11 = arith.addf %8, %10 : vector<8x128xf32>
    %cst_9 = arith.constant 0.000000e+00 : f32
    %12 = vector.broadcast %cst_9 : f32 to vector<8x128xf32>
    %13 = arith.maximumf %11, %12 : vector<8x128xf32>
    %c0_10 = arith.constant 0 : index
    %c0_11 = arith.constant 0 : index
    %14 = vector.load %arg6[%c0_10, %c0_11] : memref<128x128xf32, #tpu.memory_space<vmem>>, vector<128x128xf32>
    %cst_12 = arith.constant dense<0.000000e+00> : vector<8x128xf32>
    %15 = tpu.matmul %13, %14, %cst_12 {dimension_numbers = #tpu.dot_dimension_numbers<[1], [0], [0], [1], [0, 0, 1, 1], [], []>} : vector<8x128xf32>, vector<128x128xf32>, vector<8x128xf32> -> vector<8x128xf32>
    %c0_13 = arith.constant 0 : index
    %c0_14 = arith.constant 0 : index
    %16 = vector.load %arg7[%c0_13, %c0_14] : memref<1x128xf32, #tpu.memory_space<vmem>>, vector<1x128xf32>
    %17 = vector.broadcast %16 : vector<1x128xf32> to vector<8x128xf32>
    %18 = arith.addf %15, %17 : vector<8x128xf32>
    %cst_15 = arith.constant 0.000000e+00 : f32
    %19 = vector.broadcast %cst_15 : f32 to vector<8x128xf32>
    %20 = arith.maximumf %18, %19 : vector<8x128xf32>
    %c0_16 = arith.constant 0 : index
    %c0_17 = arith.constant 0 : index
    %21 = vector.load %arg8[%c0_16, %c0_17] : memref<128x128xf32, #tpu.memory_space<vmem>>, vector<128x128xf32>
    %cst_18 = arith.constant dense<0.000000e+00> : vector<8x128xf32>
    %22 = tpu.matmul %20, %21, %cst_18 {dimension_numbers = #tpu.dot_dimension_numbers<[1], [0], [0], [1], [0, 0, 1, 1], [], []>} : vector<8x128xf32>, vector<128x128xf32>, vector<8x128xf32> -> vector<8x128xf32>
    %c0_19 = arith.constant 0 : index
    %c0_20 = arith.constant 0 : index
    %23 = vector.load %arg9[%c0_19, %c0_20] : memref<1x128xf32, #tpu.memory_space<vmem>>, vector<1x128xf32>
    %24 = vector.broadcast %23 : vector<1x128xf32> to vector<8x128xf32>
    %25 = arith.addf %22, %24 : vector<8x128xf32>
    %26 = tpu.iota {dimensions = array<i32: 1>} : vector<8x128xi32>
    %cst_21 = arith.constant -2.000000e+01 : f32
    %cst_22 = arith.constant 2.000000e+00 : f32
    %27 = vector.broadcast %cst_21 : f32 to vector<8x128xf32>
    %28 = arith.maximumf %27, %25 : vector<8x128xf32>
    %29 = vector.broadcast %cst_22 : f32 to vector<8x128xf32>
    %30 = arith.minimumf %29, %28 : vector<8x128xf32>
    %c8_i32 = arith.constant 8 : i32
    %31 = vector.broadcast %c8_i32 : i32 to vector<8x128xi32>
    %32 = arith.cmpi sge, %26, %31 : vector<8x128xi32>
    %33 = arith.select %32, %30, %25 : vector<8x128xi1>, vector<8x128xf32>
    %c0_23 = arith.constant 0 : index
    %c0_24 = arith.constant 0 : index
    %34 = vector.load %arg10[%c0_23, %c0_24] : memref<8x128xf32, #tpu.memory_space<vmem>>, vector<8x128xf32>
    tpu.vector_store %arg10[%c0_23, %c0_24], %33 {strides = array<i32>} : memref<8x128xf32, #tpu.memory_space<vmem>>, vector<8x128xf32>,
    return
  }
  func.func @transform_0(%arg0: i32) -> (i32, i32) {
    %c0_i32 = arith.constant 0 : i32
    %c0_i32_0 = arith.constant 0 : i32
    return %arg0, %c0_i32 : i32, i32
  }
  func.func @transform_1(%arg0: i32) -> (i32, i32) {
    %c0_i32 = arith.constant 0 : i32
    %c0_i32_0 = arith.constant 0 : i32
    %c0_i32_1 = arith.constant 0 : i32
    return %c0_i32, %c0_i32_0 : i32, i32
  }
  func.func @transform_2(%arg0: i32) -> (i32, i32) {
    %c0_i32 = arith.constant 0 : i32
    %c0_i32_0 = arith.constant 0 : i32
    %c0_i32_1 = arith.constant 0 : i32
    return %c0_i32, %c0_i32_0 : i32, i32
  }
  func.func @transform_3(%arg0: i32) -> (i32, i32) {
    %c0_i32 = arith.constant 0 : i32
    %c0_i32_0 = arith.constant 0 : i32
    %c0_i32_1 = arith.constant 0 : i32
    return %c0_i32, %c0_i32_0 : i32, i32
  }
  func.func @transform_4(%arg0: i32) -> (i32, i32) {
    %c0_i32 = arith.constant 0 : i32
    %c0_i32_0 = arith.constant 0 : i32
    %c0_i32_1 = arith.constant 0 : i32
    return %c0_i32, %c0_i32_0 : i32, i32
  }
  func.func @transform_5(%arg0: i32) -> (i32, i32) {
    %c0_i32 = arith.constant 0 : i32
    %c0_i32_0 = arith.constant 0 : i32
    %c0_i32_1 = arith.constant 0 : i32
    return %c0_i32, %c0_i32_0 : i32, i32
  }
  func.func @transform_6(%arg0: i32) -> (i32, i32) {
    %c0_i32 = arith.constant 0 : i32
    %c0_i32_0 = arith.constant 0 : i32
    %c0_i32_1 = arith.constant 0 : i32
    return %c0_i32, %c0_i32_0 : i32, i32
  }
  func.func @transform_7(%arg0: i32) -> (i32, i32) {
    %c0_i32 = arith.constant 0 : i32
    %c0_i32_0 = arith.constant 0 : i32
    %c0_i32_1 = arith.constant 0 : i32
    return %c0_i32, %c0_i32_0 : i32, i32
  }
  func.func @transform_8(%arg0: i32) -> (i32, i32) {
    %c0_i32 = arith.constant 0 : i32
    %c0_i32_0 = arith.constant 0 : i32
    %c0_i32_1 = arith.constant 0 : i32
    return %c0_i32, %c0_i32_0 : i32, i32
  }
  func.func @transform_9(%arg0: i32) -> (i32, i32) {
    %c0_i32 = arith.constant 0 : i32
    %c0_i32_0 = arith.constant 0 : i32
    return %arg0, %c0_i32 : i32, i32
  }
}

</mosaic_0001>

<bundles_post_ra>
// kernel: actor_forward.1
= control target key start
LH: loop header
LB: loop body
LE: loop exit
PB: predicated region body
PF: predicated region fallthrough
CT: control target
= control target key end

     0   :  { %v504_v0 = vmov 0.0   ;;  %vm505_vm0 = vmmov 0   ;;  %s775_s3 = inlined_call_operand.vmem [shape: f32[128,128], index: 3, kind: input, shape index: {}]   ;;  %s776_s5 = inlined_call_operand.vmem [shape: f32[128,128], index: 5, kind: input, shape index: {}]   ;;  %s777_s0 = inlined_call_operand.vmem [shape: f32[8,128], index: 0, kind: input, shape index: {}]   ;;  %s778_s1 = inlined_call_operand.vmem [shape: f32[1,128], index: 1, kind: input, shape index: {}]   ;;  %s779_s2 = inlined_call_operand.vmem [shape: f32[1,128], index: 2, kind: input, shape index: {}]   ;;  %s780_s7 = inlined_call_operand.vmem [shape: f32[128,128], index: 7, kind: input, shape index: {}]   ;;  %s781_s4 = inlined_call_operand.vmem [shape: f32[1,128], index: 4, kind: input, shape index: {}]   ;;  %s782_s6 = inlined_call_operand.vmem [shape: f32[1,128], index: 6, kind: input, shape index: {}]   ;;  %s783_s8 = inlined_call_operand.vmem [shape: f32[1,128], index: 8, kind: input, shape index: {}]   ;;  %s784_s9 = inlined_call_operand.vmem [shape: f32[8,128], index: 9, kind: output, shape index: {}]  }
   0x1   :  { %397 = vmatprep.subr.mxu0 %v504_v0  ;;  %v64_v1 = vld [vmem:[%s775_s3 + $0x78] sm:$0xff]  ;;  %v63_v2 = vld [vmem:[%s775_s3 + $0x70] sm:$0xff]  ;;  %429 = vmatprep.mubr.msk.f32.mxu0 %vm505_vm0, %v504_v0  ;;  %v62_v3 = vld [vmem:[%s775_s3 + $0x68] sm:$0xff] }
   0x2   :  { %398 = vmatpush3.msra.mxu0 %v64_v1  ;;  %432 = vmatprep.subr.mxu1 %v504_v0  ;;  %v61_v4 = vld [vmem:[%s775_s3 + $0x60] sm:$0xff]  ;;  %v60_v5 = vld [vmem:[%s775_s3 + $0x58] sm:$0xff]  ;;  %v157_v7 = vld [vmem:[%s776_s5 + $0x70] sm:$0xff]  ;;  %v330_v1 = vlaneseq }
   0x3   :  { %399 = vmatprep.subr.mxu0 %v504_v0  ;;  %464 = vmatprep.mubr.msk.f32.mxu1 %vm505_vm0, %v504_v0  ;;  %v158_v6 = vld [vmem:[%s776_s5 + $0x78] sm:$0xff]  ;;  %v59_v8 = vld [vmem:[%s775_s3 + $0x50] sm:$0xff]  ;;  %v156_v9 = vld [vmem:[%s776_s5 + $0x68] sm:$0xff] }
   0x4   :  { %400 = vmatpush3.msra.mxu0 %v63_v2  ;;  %433 = vmatpush3.msra.mxu1 %v158_v6  ;;  %v58_v10 = vld [vmem:[%s775_s3 + $0x48] sm:$0xff]  ;;  %v155_v11 = vld [vmem:[%s776_s5 + $0x60] sm:$0xff]  ;;  %v154_v13 = vld [vmem:[%s776_s5 + $0x58] sm:$0xff] }
   0x5   :  { %401 = vmatprep.subr.mxu0 %v504_v0  ;;  %434 = vmatprep.subr.mxu1 %v504_v0  ;;  %v57_v12 = vld [vmem:[%s775_s3 + $0x40] sm:$0xff]  ;;  %v56_v14 = vld [vmem:[%s775_s3 + $0x38] sm:$0xff]  ;;  %v153_v15 = vld [vmem:[%s776_s5 + $0x50] sm:$0xff] }
   0x6   :  { %402 = vmatpush3.msra.mxu0 %v62_v3  ;;  %435 = vmatpush3.msra.mxu1 %v157_v7  ;;  %v55_v16 = vld [vmem:[%s775_s3 + $0x30] sm:$0xff]  ;;  %v152_v17 = vld [vmem:[%s776_s5 + $0x48] sm:$0xff]  ;;  %v151_v19 = vld [vmem:[%s776_s5 + $0x40] sm:$0xff]  ;;  %v331_v3 = vand.u32 127, %v330_v1 }
   0x7   :  { %403 = vmatprep.subr.mxu0 %v504_v0  ;;  %436 = vmatprep.subr.mxu1 %v504_v0  ;;  %v54_v18 = vld [vmem:[%s775_s3 + $0x28] sm:$0xff]  ;;  %v53_v20 = vld [vmem:[%s775_s3 + $0x20] sm:$0xff]  ;;  %v150_v21 = vld [vmem:[%s776_s5 + $0x38] sm:$0xff] }
   0x8   :  { %404 = vmatpush3.msra.mxu0 %v61_v4  ;;  %437 = vmatpush3.msra.mxu1 %v156_v9  ;;  %v32_v22 = vld [vmem:[%s777_s0] sm:$0xff]  ;;  %v52_v24 = vld [vmem:[%s775_s3 + $0x18] sm:$0xff]  ;;  %v149_v25 = vld [vmem:[%s776_s5 + $0x30] sm:$0xff]  ;;  %vm334_vm1 = vcmp.ge.s32.totalorder %v331_v3, 8 }
   0x9   :  { %405 = vmatprep.subr.mxu0 %v504_v0  ;;  %438 = vmatprep.subr.mxu1 %v504_v0  ;;  %v341_v23 = vld [vmem:[%s778_s1] ss:$0 sm:$0xff]  ;;  %v51_v26 = vld [vmem:[%s775_s3 + $0x10] sm:$0xff]  ;;  %v148_v28 = vld [vmem:[%s776_s5 + $0x28] sm:$0xff] }
   0xa   :  { %406 = vmatpush3.msra.mxu0 %v60_v5  ;;  %439 = vmatpush3.msra.mxu1 %v155_v11  ;;  %v40_v27 = vsub.f32 %v32_v22, %v341_v23  ;;  %v342_v29 = vld [vmem:[%s779_s2] ss:$0 sm:$0xff]  ;;  %v50_v30 = vld [vmem:[%s775_s3 + $0x8] sm:$0xff]  ;;  %v146_v34 = vld [vmem:[%s776_s5 + $0x18] sm:$0xff] }
   0xb   :  { %407 = vmatprep.subr.mxu0 %v504_v0  ;;  %440 = vmatprep.subr.mxu1 %v504_v0  ;;  %v147_v31 = vld [vmem:[%s776_s5 + $0x20] sm:$0xff]  ;;  %v145_v35 = vld [vmem:[%s776_s5 + $0x10] sm:$0xff]  ;;  %v144_v36 = vld [vmem:[%s776_s5 + $0x8] sm:$0xff] }
   0xc   :  { %408 = vmatpush3.msra.mxu0 %v59_v8  ;;  %441 = vmatpush3.msra.mxu1 %v154_v13  ;;  %v49_v32 = vld [vmem:[%s775_s3] sm:$0xff]  ;;  %v48_v33 = vmul.f32 %v342_v29, %v40_v27  ;;  %v252_v38 = vld [vmem:[%s780_s7 + $0x78] sm:$0xff]  ;;  %v251_v39 = vld [vmem:[%s780_s7 + $0x70] sm:$0xff] }
   0xd   :  { %409 = vmatprep.subr.mxu0 %v504_v0  ;;  %442 = vmatprep.subr.mxu1 %v504_v0  ;;  %v143_v37 = vld [vmem:[%s776_s5] sm:$0xff]  ;;  %v250_v40 = vld [vmem:[%s780_s7 + $0x68] sm:$0xff]  ;;  %v248_v42 = vld [vmem:[%s780_s7 + $0x58] sm:$0xff] }
   0xe   :  { %410 = vmatpush3.msra.mxu0 %v58_v10  ;;  %443 = vmatpush3.msra.mxu1 %v153_v15  ;;  %v249_v41 = vld [vmem:[%s780_s7 + $0x60] sm:$0xff]  ;;  %v247_v43 = vld [vmem:[%s780_s7 + $0x50] sm:$0xff]  ;;  %v246_v44 = vld [vmem:[%s780_s7 + $0x48] sm:$0xff] }
   0xf   :  { %411 = vmatprep.subr.mxu0 %v504_v0  ;;  %444 = vmatprep.subr.mxu1 %v504_v0  ;;  %v245_v45 = vld [vmem:[%s780_s7 + $0x40] sm:$0xff]  ;;  %v244_v46 = vld [vmem:[%s780_s7 + $0x38] sm:$0xff]  ;;  %v243_v47 = vld [vmem:[%s780_s7 + $0x30] sm:$0xff] }
  0x10   :  { %412 = vmatpush3.msra.mxu0 %v57_v12  ;;  %445 = vmatpush3.msra.mxu1 %v152_v17  ;;  %v242_v48 = vld [vmem:[%s780_s7 + $0x28] sm:$0xff]  ;;  %v241_v49 = vld [vmem:[%s780_s7 + $0x20] sm:$0xff]  ;;  %v240_v50 = vld [vmem:[%s780_s7 + $0x18] sm:$0xff] }
  0x11   :  { %413 = vmatprep.subr.mxu0 %v504_v0  ;;  %446 = vmatprep.subr.mxu1 %v504_v0  ;;  %v343_v51 = vld [vmem:[%s781_s4] ss:$0 sm:$0xff]  ;;  %v239_v56 = vld [vmem:[%s780_s7 + $0x10] sm:$0xff]  ;;  %v238_v57 = vld [vmem:[%s780_s7 + $0x8] sm:$0xff] }
  0x12   :  { %414 = vmatpush3.msra.mxu0 %v56_v14  ;;  %447 = vmatpush3.msra.mxu1 %v151_v19  ;;  %v237_v58 = vld [vmem:[%s780_s7] sm:$0xff] }
  0x13   :  { %415 = vmatprep.subr.mxu0 %v504_v0  ;;  %448 = vmatprep.subr.mxu1 %v504_v0  ;;  %v344_v59 = vld [vmem:[%s782_s6] ss:$0 sm:$0xff] }
  0x14   :  { %416 = vmatpush3.msra.mxu0 %v55_v16  ;;  %449 = vmatpush3.msra.mxu1 %v150_v21  ;;  %v345_v2 = vld [vmem:[%s783_s8] ss:$0 sm:$0xff] }
  0x15   :  { %417 = vmatprep.subr.mxu0 %v504_v0  ;;  %450 = vmatprep.subr.mxu1 %v504_v0 }
  0x16   :  { %418 = vmatpush3.msra.mxu0 %v54_v18  ;;  %451 = vmatpush3.msra.mxu1 %v149_v25 }
  0x17   :  { %419 = vmatprep.subr.mxu0 %v504_v0  ;;  %452 = vmatprep.subr.mxu1 %v504_v0 }
  0x18   :  { %420 = vmatpush3.msra.mxu0 %v53_v20  ;;  %453 = vmatpush3.msra.mxu1 %v148_v28 }
  0x19   :  { %421 = vmatprep.subr.mxu0 %v504_v0  ;;  %454 = vmatprep.subr.mxu1 %v504_v0 }
  0x1a   :  { %422 = vmatpush3.msra.mxu0 %v52_v24  ;;  %455 = vmatpush3.msra.mxu1 %v147_v31 }
  0x1b   :  { %423 = vmatprep.subr.mxu0 %v504_v0  ;;  %456 = vmatprep.subr.mxu1 %v504_v0 }
  0x1c   :  { %424 = vmatpush3.msra.mxu0 %v51_v26  ;;  %457 = vmatpush3.msra.mxu1 %v146_v34 }
  0x1d   :  { %425 = vmatprep.subr.mxu0 %v504_v0  ;;  %458 = vmatprep.subr.mxu1 %v504_v0 }
  0x1e   :  { %426 = vmatpush3.msra.mxu0 %v50_v30  ;;  %459 = vmatpush3.msra.mxu1 %v145_v35 }
  0x1f   :  { %427 = vmatprep.subr.mxu0 %v504_v0  ;;  %460 = vmatprep.subr.mxu1 %v504_v0 }
  0x20   :  { %428 = vmatpush3.msra.mxu0 %v49_v32  ;;  %461 = vmatpush3.msra.mxu1 %v144_v36 }
  0x21   :  { %430 = vmatmul.mubr.f32.vlgmr.msra.gmra.mxu0 %v48_v33  ;;  %467 = vmatprep.subr.mxu0 %v504_v0 }
  0x22   :  { %499 = vmatprep.mubr.msk.f32.mxu0 %vm505_vm0, %v504_v0  ;;  %462 = vmatprep.subr.mxu1 %v504_v0 }
  0x23   :  { %463 = vmatpush3.msra.mxu1 %v143_v37  ;;  %468 = vmatpush3.msra.mxu0 %v252_v38 }
  0x24   :  { %469 = vmatprep.subr.mxu0 %v504_v0 }
  0x25   :  { %470 = vmatpush3.msra.mxu0 %v251_v39 }
  0x26   :  { %471 = vmatprep.subr.mxu0 %v504_v0 }
  0x27   :  { %472 = vmatpush3.msra.mxu0 %v250_v40 }
  0x28   :  { %473 = vmatprep.subr.mxu0 %v504_v0 }
  0x29   :  { %474 = vmatpush3.msra.mxu0 %v249_v41 }
  0x2a   :  { %475 = vmatprep.subr.mxu0 %v504_v0 }
  0x2b   :  { %476 = vmatpush3.msra.mxu0 %v248_v42 }
  0x2c   :  { %477 = vmatprep.subr.mxu0 %v504_v0 }
  0x2d   :  { %478 = vmatpush3.msra.mxu0 %v247_v43 }
  0x2e   :  { %479 = vmatprep.subr.mxu0 %v504_v0 }
  0x2f   :  { %480 = vmatpush3.msra.mxu0 %v246_v44 }
  0x30   :  { %481 = vmatprep.subr.mxu0 %v504_v0 }
  0x31   :  { %482 = vmatpush3.msra.mxu0 %v245_v45 }
  0x32   :  { %483 = vmatprep.subr.mxu0 %v504_v0 }
  0x33   :  { %484 = vmatpush3.msra.mxu0 %v244_v46 }
  0x34   :  { %485 = vmatprep.subr.mxu0 %v504_v0 }
  0x35   :  { %486 = vmatpush3.msra.mxu0 %v243_v47 }
  0x36   :  { %487 = vmatprep.subr.mxu0 %v504_v0 }
  0x37   :  { %488 = vmatpush3.msra.mxu0 %v242_v48 }
  0x38   :  { %489 = vmatprep.subr.mxu0 %v504_v0 }
  0x39   :  { %490 = vmatpush3.msra.mxu0 %v241_v49 }
  0x3a   :  { %491 = vmatprep.subr.mxu0 %v504_v0 }
  0x3b   :  { %492 = vmatpush3.msra.mxu0 %v240_v50 }
  0x3c   :  { %493 = vmatprep.subr.mxu0 %v504_v0 }
  0x3d   :  { %494 = vmatpush3.msra.mxu0 %v239_v56 }
  0x3e   :  { %495 = vmatprep.subr.mxu0 %v504_v0 }
  0x3f   :  { %496 = vmatpush3.msra.mxu0 %v238_v57 }
  0x40   :  { %497 = vmatprep.subr.mxu0 %v504_v0 }
  0x41   :  { %498 = vmatpush3.msra.mxu0 %v237_v58 }
  0xe1   :  { %v138_v52 = vpop.f32.mrf.mxu0 }
  0xe2   :  { %v139_v53 = vadd.f32 %v343_v51, %v138_v52 }
  0xe3   :  { %v431_v54 = vpop.f32.mrf.mxu0 }
  0xe4   :  { %v142_v55 = vmax.f32 %v139_v53, 0.0 }
  0xe6   :  { %465 = vmatmul.mubr.f32.vlgmr.msra.gmra.mxu1 %v142_v55 }
 0x1a6   :  { %v232_v60 = vpop.f32.mrf.mxu1 }
 0x1a7   :  { %v233_v61 = vadd.f32 %v344_v59, %v232_v60 }
 0x1a8   :  { %v466_v62 = vpop.f32.mrf.mxu1 }
 0x1a9   :  { %v236_v63 = vmax.f32 %v233_v61, 0.0 }
 0x1ab   :  { %500 = vmatmul.mubr.f32.vlgmr.msra.gmra.mxu0 %v236_v63 }
 0x26b   :  { %v326_v0 = vpop.f32.mrf.mxu0 }
 0x26c   :  { %v327_v4 = vadd.f32 %v345_v2, %v326_v0 }
 0x26d   :  { %v501_v5 = vpop.f32.mrf.mxu0 }
 0x26e   :  { %v332_v6 = vmax.f32 %v327_v4, -20.0 }
 0x270   :  { %v333_v7 = vmin.f32 %v332_v6, 2.0 }
 0x272   :  { %v335_v8 = vsel %vm334_vm1, %v333_v7, %v327_v4 }
 0x273   :  { %336 = vst [vmem:[%s784_s9] sm:$0xff] %v335_v8 }

</bundles_post_ra>
